<compile_context>
chip_gen: v7x
topology: tpu7x:2x2x1
jax: 0.10.0
libtpu: 0.0.40
codegen_flags: <defaults>
</compile_context>

<pallas_src>
import functools

import jax
import jax.numpy as jnp
from jax.experimental import pallas as pl
from jax.experimental.pallas import tpu as pltpu


def _round_up(x, m):
    return ((x + m - 1) // m) * m


def _linear_kernel(x_ref, w_ref, b_ref, o_ref):
    """Whole-reduction tile: one MXU pass per (tm, tn) output tile, bias fused."""
    o_ref[...] = (
        jnp.dot(x_ref[...], w_ref[...], preferred_element_type=jnp.float32)
        + b_ref[...]
    ).astype(o_ref.dtype)


def _linear_kernel_acc(x_ref, w_ref, b_ref, o_ref, acc_ref):
    """Split-K fallback: f32 accumulator across grid axis 2 (large n only)."""
    k = pl.program_id(2)

    @pl.when(k == 0)
    def _():
        acc_ref[...] = jnp.zeros_like(acc_ref)

    acc_ref[...] += jnp.dot(
        x_ref[...], w_ref[...], preferred_element_type=jnp.float32
    )

    @pl.when(k == pl.num_programs(2) - 1)
    def _():
        o_ref[...] = (acc_ref[...] + b_ref[...]).astype(o_ref.dtype)


@functools.partial(jax.jit, static_argnames=("vmem_tile_budget",))
def linear_probe_forward(x, w_t, b, *, vmem_tile_budget=28 * 1024 * 1024):
    """y = flatten(x) @ w_t + b   (equivalent to nn.Linear(n, d).forward)."""
    out_dtype = x.dtype
    B = x.shape[0]
    x2 = x.reshape(B, -1)                       # [B, n] == torch x.view(B, -1)
    n, d = w_t.shape
    assert x2.shape[1] == n and b.shape == (d,)

    in_dtype = jnp.bfloat16
    in_bytes = 2
    out_bytes = jnp.dtype(out_dtype).itemsize

    # ---- M tile: whole batch when small, full MXU height otherwise ----------
    if B <= 128:
        tm, Bp = B, B                 # block == full dim -> no (8,128) constraint
    else:
        tm = 128
        Bp = _round_up(B, tm)

    # ---- N tile: full d when small (avoids padding the weight stream), ------
    # ---- lane-dense multiple of 128 when large ------------------------------
    if d <= 512:
        tn, dp = d, d
    else:
        dp = _round_up(d, 128)
        tn = next(t for t in (512, 256, 128) if dp % t == 0)

    # ---- decide whether the whole reduction fits in (double-buffered) VMEM --
    def tiles_fit(n_blk, with_acc):
        x_tile = tm * n_blk * in_bytes
        w_tile = n_blk * tn * in_bytes
        o_tile = tm * tn * out_bytes
        acc = tm * tn * 4 if with_acc else 0
        return 2 * (x_tile + w_tile + o_tile) + acc <= vmem_tile_budget

    collapse_k = tiles_fit(n, with_acc=False)

    if collapse_k:
        n_p = n                                   # full reduction per tile
    else:
        tk = 128
        for cand in (2048, 1024, 512, 256):       # large K tiles amortize DMA
            if tiles_fit(cand, with_acc=True):
                tk = cand
                break
        n_p = _round_up(n, tk)

    # ---- pad (zeros are neutral for the matmul) and cast operands -----------
    x2p = x2 if (Bp == B and n_p == n) else jnp.pad(x2, ((0, Bp - B), (0, n_p - n)))
    w_tp = w_t if (n_p == n and dp == d) else jnp.pad(w_t, ((0, n_p - n), (0, dp - d)))
    bp = b if dp == d else jnp.pad(b, (0, dp - d))

    if x2p.dtype != in_dtype:
        x2p = x2p.astype(in_dtype)
    if w_tp.dtype != in_dtype:
        w_tp = w_tp.astype(in_dtype)
    b2 = bp.reshape(1, dp).astype(jnp.float32)    # broadcast over tm rows in-kernel

    cost = pl.CostEstimate(
        flops=2 * Bp * n_p * dp,
        transcendentals=0,
        bytes_accessed=(Bp * n_p + n_p * dp) * in_bytes + dp * 4 + Bp * dp * out_bytes,
    )
    cparams_kw = dict(vmem_limit_bytes=48 * 1024 * 1024)

    if collapse_k:
        grid = (Bp // tm, dp // tn)
        y = pl.pallas_call(
            _linear_kernel,
            out_shape=jax.ShapeDtypeStruct((Bp, dp), out_dtype),
            grid_spec=pltpu.PrefetchScalarGridSpec(
                num_scalar_prefetch=0,
                grid=grid,
                in_specs=[
                    pl.BlockSpec((tm, n_p), lambda i, j: (i, 0)),   # x row-block
                    pl.BlockSpec((n_p, tn), lambda i, j: (0, j)),   # full-K weight slab
                    pl.BlockSpec((1, tn), lambda i, j: (0, j)),     # bias
                ],
                out_specs=pl.BlockSpec((tm, tn), lambda i, j: (i, j)),
            ),
            compiler_params=pltpu.CompilerParams(
                dimension_semantics=("parallel", "parallel"), **cparams_kw
            ),
            cost_estimate=cost,
        )(x2p, w_tp, b2)
    else:
        grid = (Bp // tm, dp // tn, n_p // tk)
        y = pl.pallas_call(
            _linear_kernel_acc,
            out_shape=jax.ShapeDtypeStruct((Bp, dp), out_dtype),
            grid_spec=pltpu.PrefetchScalarGridSpec(
                num_scalar_prefetch=0,
                grid=grid,
                in_specs=[
                    pl.BlockSpec((tm, tk), lambda i, j, k: (i, k)),
                    pl.BlockSpec((tk, tn), lambda i, j, k: (k, j)),
                    pl.BlockSpec((1, tn), lambda i, j, k: (0, j)),
                ],
                out_specs=pl.BlockSpec((tm, tn), lambda i, j, k: (i, j)),
                scratch_shapes=[pltpu.VMEM((tm, tn), jnp.float32)],
            ),
            compiler_params=pltpu.CompilerParams(
                dimension_semantics=("parallel", "parallel", "arbitrary"),
                **cparams_kw,
            ),
            cost_estimate=cost,
        )(x2p, w_tp, b2)

    if Bp != B or dp != d:
        y = y[:B, :d]
    return y


if __name__ == "__main__":
    # Small shapes consistent with the module: x is [B, C, H, W],
    # flattened feature size n = C*H*W, probe output dim d.
    B, C, H, W = 2, 4, 16, 16
    n = C * H * W            # 1024
    d = 32

    key = jax.random.PRNGKey(0)
    kx, kw, kb = jax.random.split(key, 3)

    x = jax.random.normal(kx, (B, C, H, W), dtype=jnp.float32)

    # Parameter init mimicking nn.Linear default: U(-1/sqrt(n), 1/sqrt(n)).
    bound = 1.0 / jnp.sqrt(jnp.float32(n))
    weight = jax.random.uniform(kw, (d, n), minval=-bound, maxval=bound,
                                dtype=jnp.float32)      # torch layout [d, n]
    bias = jax.random.uniform(kb, (d,), minval=-bound, maxval=bound,
                              dtype=jnp.float32)

    w_t = weight.T                                      # [n, d] for the kernel

    # f32 reference (torch: x.view(B, -1) @ weight.T + bias).
    y_ref = x.reshape(B, -1) @ weight.T + bias

    # Main path: collapsed-K, single-dot kernel.
    y = linear_probe_forward(x, w_t, bias)
    y = jax.block_until_ready(y)
    assert y.shape == (B, d)
    # bf16 operands with f32 accumulation -> loose-but-tight-enough tolerance.
    assert jnp.allclose(y, y_ref, atol=5e-2, rtol=5e-2), float(
        jnp.max(jnp.abs(y - y_ref))
    )

    # Also exercise the split-K fallback path (forced via a tiny tile budget).
    y2 = linear_probe_forward(x, w_t, bias, vmem_tile_budget=64 * 1024)
    y2 = jax.block_until_ready(y2)
    assert jnp.allclose(y2, y_ref, atol=5e-2, rtol=5e-2), float(
        jnp.max(jnp.abs(y2 - y_ref))
    )

    print("KERNEL_OK")
</pallas_src>

<mosaic_0001>
module attributes {stable_mosaic.version = 11 : i64} {
  func.func @_linear_kernel(%arg0: i32, %arg1: i32, %arg2: memref<2x1024xbf16, #tpu.memory_space<vmem>>, %arg3: memref<1024x32xbf16, #tpu.memory_space<vmem>>, %arg4: memref<1x32xf32, #tpu.memory_space<vmem>>, %arg5: memref<2x32xf32, #tpu.memory_space<vmem>>) attributes {dimension_semantics = [#tpu.dimension_semantics<parallel>, #tpu.dimension_semantics<parallel>], iteration_bounds = array<i64: 1, 1>, scalar_prefetch = 0 : i64, scratch_operands = 0 : i64, tpu.core_type = #tpu.core_type<tc>, window_params = [{transform_indices = @transform_0, window_bounds = array<i64: 2, 1024>}, {transform_indices = @transform_1, window_bounds = array<i64: 1024, 32>}, {transform_indices = @transform_2, window_bounds = array<i64: 1, 32>}, {transform_indices = @transform_3, window_bounds = array<i64: 2, 32>}]} {
    %c0 = arith.constant 0 : index
    %c0_0 = arith.constant 0 : index
    %0 = vector.load %arg2[%c0, %c0_0] : memref<2x1024xbf16, #tpu.memory_space<vmem>>, vector<2x1024xbf16>
    %c0_1 = arith.constant 0 : index
    %c0_2 = arith.constant 0 : index
    %1 = vector.load %arg3[%c0_1, %c0_2] : memref<1024x32xbf16, #tpu.memory_space<vmem>>, vector<1024x32xbf16>
    %cst = arith.constant dense<0.000000e+00> : vector<2x32xf32>
    %2 = tpu.matmul %0, %1, %cst {dimension_numbers = #tpu.dot_dimension_numbers<[1], [0], [0], [1], [0, 0, 1, 1], [], []>} : vector<2x1024xbf16>, vector<1024x32xbf16>, vector<2x32xf32> -> vector<2x32xf32>
    %c0_3 = arith.constant 0 : index
    %c0_4 = arith.constant 0 : index
    %3 = vector.load %arg4[%c0_3, %c0_4] : memref<1x32xf32, #tpu.memory_space<vmem>>, vector<1x32xf32>
    %4 = vector.broadcast %3 : vector<1x32xf32> to vector<2x32xf32>
    %5 = arith.addf %2, %4 : vector<2x32xf32>
    %c0_5 = arith.constant 0 : index
    %c0_6 = arith.constant 0 : index
    %6 = vector.load %arg5[%c0_5, %c0_6] : memref<2x32xf32, #tpu.memory_space<vmem>>, vector<2x32xf32>
    tpu.vector_store %arg5[%c0_5, %c0_6], %5 {strides = array<i32>} : memref<2x32xf32, #tpu.memory_space<vmem>>, vector<2x32xf32>,
    return
  }
  func.func @transform_0(%arg0: i32, %arg1: i32) -> (i32, i32) {
    %c0_i32 = arith.constant 0 : i32
    %c0_i32_0 = arith.constant 0 : i32
    return %arg0, %c0_i32 : i32, i32
  }
  func.func @transform_1(%arg0: i32, %arg1: i32) -> (i32, i32) {
    %c0_i32 = arith.constant 0 : i32
    %c0_i32_0 = arith.constant 0 : i32
    return %c0_i32, %arg1 : i32, i32
  }
  func.func @transform_2(%arg0: i32, %arg1: i32) -> (i32, i32) {
    %c0_i32 = arith.constant 0 : i32
    %c0_i32_0 = arith.constant 0 : i32
    return %c0_i32, %arg1 : i32, i32
  }
  func.func @transform_3(%arg0: i32, %arg1: i32) -> (i32, i32) {
    %c0_i32 = arith.constant 0 : i32
    return %arg0, %arg1 : i32, i32
  }
}

</mosaic_0001>

<bundles_post_ra>
// kernel: linear_probe_forward.1
= control target key start
LH: loop header
LB: loop body
LE: loop exit
PB: predicated region body
PF: predicated region fallthrough
CT: control target
= control target key end

     0   :  { %v157_v28 = vlaneseq  ;;  %v1014_v36 = vmov 1966171168   ;;  %s1259_s0 = inlined_call_operand.vmem [shape: bf16[2,1024], index: 0, kind: input, shape index: {}]   ;;  %s1260_s1 = inlined_call_operand.vmem [shape: bf16[1024,32], index: 1, kind: input, shape index: {}]   ;;  %s1261_s2 = inlined_call_operand.vmem [shape: f32[1,32], index: 2, kind: input, shape index: {}]   ;;  %s1262_s3 = inlined_call_operand.hbm [shape: f32[2,32], index: 3, kind: output, shape index: {}]  }
   0x1   :  { %v925_v0 = vld [vmem:[%s1260_s1 + $0x40] sm:$0xff]   ;;  %v929_v4 = vld [vmem:[%s1260_s1 + $0x48] sm:$0xff]   ;;  %v933_v8 = vld [vmem:[%s1260_s1 + $0x50] sm:$0xff]   ;;  %v155_v37 = vunpack.c.l.s4 %v1014_v36 }
   0x2   :  { %v926_v1 = vld [vmem:[%s1260_s1 + $0xc0] sm:$0xff]   ;;  %835 = vmatprep.subr.bf16.mxu0 %v925_v0  ;;  %v930_v5 = vld [vmem:[%s1260_s1 + $0xc8] sm:$0xff]   ;;  %v934_v9 = vld [vmem:[%s1260_s1 + $0xd0] sm:$0xff]   ;;  %v158_v33 = vshrl.u32 %v157_v28, 7 }
   0x3   :  { %v927_v2 = vld [vmem:[%s1260_s1] sm:$0xff]   ;;  %857 = vmatprep.subr.bf16.mxu1 %v926_v1  ;;  %v931_v6 = vld [vmem:[%s1260_s1 + $0x8] sm:$0xff]   ;;  %v935_v10 = vld [vmem:[%s1260_s1 + $0x10] sm:$0xff]   ;;  %v156_v40 = vunpack.c.0.s8 %v155_v37 }
   0x4   :  { %v928_v3 = vld [vmem:[%s1260_s1 + $0x80] sm:$0xff]   ;;  %836 = vmatpush3.bf16.msra.mxu0 %v927_v2  ;;  %v932_v7 = vld [vmem:[%s1260_s1 + $0x88] sm:$0xff]   ;;  %v936_v11 = vld [vmem:[%s1260_s1 + $0x90] sm:$0xff]  }
   0x5   :  { %858 = vmatpush3.bf16.msra.mxu1 %v928_v3  ;;  %837 = vmatprep.subr.bf16.mxu0 %v929_v4  ;;  %v937_v12 = vld [vmem:[%s1260_s1 + $0x58] sm:$0xff]   ;;  %v941_v16 = vld [vmem:[%s1260_s1 + $0x60] sm:$0xff]   ;;  %v945_v20 = vld [vmem:[%s1260_s1 + $0x68] sm:$0xff]   ;;  %v1141_v41 = vsub.s32 %v156_v40, %v158_v33 }
   0x6   :  { %859 = vmatprep.subr.bf16.mxu1 %v930_v5  ;;  %v938_v13 = vld [vmem:[%s1260_s1 + $0xd8] sm:$0xff]   ;;  %v942_v17 = vld [vmem:[%s1260_s1 + $0xe0] sm:$0xff]   ;;  %v946_v21 = vld [vmem:[%s1260_s1 + $0xe8] sm:$0xff]  }
   0x7   :  { %v939_v14 = vld [vmem:[%s1260_s1 + $0x18] sm:$0xff]   ;;  %v943_v18 = vld [vmem:[%s1260_s1 + $0x20] sm:$0xff]   ;;  %v947_v22 = vld [vmem:[%s1260_s1 + $0x28] sm:$0xff]  }
   0x8   :  { %838 = vmatpush3.bf16.msra.mxu0 %v931_v6  ;;  %v940_v15 = vld [vmem:[%s1260_s1 + $0x98] sm:$0xff]   ;;  %v944_v19 = vld [vmem:[%s1260_s1 + $0xa0] sm:$0xff]   ;;  %v948_v23 = vld [vmem:[%s1260_s1 + $0xa8] sm:$0xff]  }
   0x9   :  { %860 = vmatpush3.bf16.msra.mxu1 %v932_v7  ;;  %839 = vmatprep.subr.bf16.mxu0 %v933_v8  ;;  %v949_v24 = vld [vmem:[%s1260_s1 + $0x70] sm:$0xff]   ;;  %v953_v29 = vld [vmem:[%s1260_s1 + $0x78] sm:$0xff]   ;;  %v16_v34 = vld [vmem:[%s1259_s0] sm:$0xff] }
   0xa   :  { %861 = vmatprep.subr.bf16.mxu1 %v934_v9  ;;  %v950_v25 = vld [vmem:[%s1260_s1 + $0xf0] sm:$0xff]   ;;  %v954_v30 = vld [vmem:[%s1260_s1 + $0xf8] sm:$0xff]   ;;  %v958_v35 = vld [vmem:[%s1260_s1 + $0x140] sm:$0xff]   ;;  %v153_v39 = vcombine.high %v16_v34, %v16_v34  ;;  %v160_v42 = vrot.slane %v16_v34, %v1141_v41 }
   0xb   :  { %v951_v26 = vld [vmem:[%s1260_s1 + $0x30] sm:$0xff]   ;;  %v955_v31 = vld [vmem:[%s1260_s1 + $0x38] sm:$0xff]   ;;  %v959_v38 = vld [vmem:[%s1260_s1 + $0x1c0] sm:$0xff]  }
   0xc   :  { %840 = vmatpush3.bf16.msra.mxu0 %v935_v10  ;;  %v952_v27 = vld [vmem:[%s1260_s1 + $0xb0] sm:$0xff]   ;;  %v956_v32 = vld [vmem:[%s1260_s1 + $0xb8] sm:$0xff]   ;;  %v1145_v43 = vrot.slane %v153_v39, %v1141_v41  ;;  %v168_v44 = vcombine.high %v160_v42, %v160_v42  ;;  %v176_v45 = vrot.slane %v160_v42, %v1141_v41  ;;  %v960_v48 = vld [vmem:[%s1260_s1 + $0x100] sm:$0xff]  }
   0xd   :  { %862 = vmatpush3.bf16.msra.mxu1 %v936_v11  ;;  %841 = vmatprep.subr.bf16.mxu0 %v937_v12  ;;  %v962_v51 = vld [vmem:[%s1260_s1 + $0x148] sm:$0xff]   ;;  %v961_v53 = vld [vmem:[%s1260_s1 + $0x180] sm:$0xff]   ;;  %v966_v57 = vld [vmem:[%s1260_s1 + $0x150] sm:$0xff]  }
   0xe   :  { %863 = vmatprep.subr.bf16.mxu1 %v938_v13  ;;  %v169_v46 = vcombine.high %v1145_v43, %v1145_v43  ;;  %v190_v47 = vrot.slane %v168_v44, %v1141_v41  ;;  %v198_v50 = vcombine.high %v176_v45, %v176_v45  ;;  %v963_v54 = vld [vmem:[%s1260_s1 + $0x1c8] sm:$0xff]   ;;  %v967_v59 = vld [vmem:[%s1260_s1 + $0x1d0] sm:$0xff]   ;;  %v970_v61 = vld [vmem:[%s1260_s1 + $0x158] sm:$0xff]  }
   0xf   :  { %v964_v56 = vld [vmem:[%s1260_s1 + $0x108] sm:$0xff]   ;;  %v968_v60 = vld [vmem:[%s1260_s1 + $0x110] sm:$0xff]   ;;  %v971_v63 = vld [vmem:[%s1260_s1 + $0x1d8] sm:$0xff]  }
  0x10   :  { %842 = vmatpush3.bf16.msra.mxu0 %v939_v14  ;;  %v197_v49 = vrot.slane %v169_v46, %v1141_v41  ;;  %626 = vmatprep.mubr.bf16.mxu0 %v190_v47  ;;  %v200_v52 = vcombine.high %v190_v47, %v190_v47  ;;  %v965_v58 = vld [vmem:[%s1260_s1 + $0x188] sm:$0xff]   ;;  %v969_v62 = vld [vmem:[%s1260_s1 + $0x190] sm:$0xff]   ;;  %v972_v0 = vld [vmem:[%s1260_s1 + $0x118] sm:$0xff]  }
  0x11   :  { %864 = vmatpush3.bf16.msra.mxu1 %v940_v15  ;;  %843 = vmatprep.subr.bf16.mxu0 %v941_v16  ;;  %v974_v1 = vld [vmem:[%s1260_s1 + $0x160] sm:$0xff]   ;;  %v973_v2 = vld [vmem:[%s1260_s1 + $0x198] sm:$0xff]   ;;  %v978_v5 = vld [vmem:[%s1260_s1 + $0x168] sm:$0xff]  }
  0x12   :  { %865 = vmatprep.subr.bf16.mxu1 %v942_v17  ;;  %v201_v55 = vcombine.high %v197_v49, %v197_v49  ;;  %666 = vmatprep.mubr.bf16.mxu1 %v200_v52  ;;  %v975_v3 = vld [vmem:[%s1260_s1 + $0x1e0] sm:$0xff]   ;;  %v979_v7 = vld [vmem:[%s1260_s1 + $0x1e8] sm:$0xff]   ;;  %v982_v9 = vld [vmem:[%s1260_s1 + $0x170] sm:$0xff]  }
  0x13   :  { %v976_v4 = vld [vmem:[%s1260_s1 + $0x120] sm:$0xff]   ;;  %v980_v8 = vld [vmem:[%s1260_s1 + $0x128] sm:$0xff]  }
  0x14   :  { %844 = vmatpush3.bf16.msra.mxu0 %v943_v18  ;;  %v977_v6 = vld [vmem:[%s1260_s1 + $0x1a0] sm:$0xff]  }
  0x15   :  { %866 = vmatpush3.bf16.msra.mxu1 %v944_v19  ;;  %845 = vmatprep.subr.bf16.mxu0 %v945_v20 }
  0x16   :  { %867 = vmatprep.subr.bf16.mxu1 %v946_v21 }
  0x18   :  { %846 = vmatpush3.bf16.msra.mxu0 %v947_v22 }
  0x19   :  { %868 = vmatpush3.bf16.msra.mxu1 %v948_v23  ;;  %847 = vmatprep.subr.bf16.mxu0 %v949_v24 }
  0x1a   :  { %869 = vmatprep.subr.bf16.mxu1 %v950_v25 }
  0x1c   :  { %848 = vmatpush3.bf16.msra.mxu0 %v951_v26 }
  0x1d   :  { %870 = vmatpush3.bf16.msra.mxu1 %v952_v27  ;;  %849 = vmatprep.subr.bf16.mxu0 %v953_v29 }
  0x1e   :  { %871 = vmatprep.subr.bf16.mxu1 %v954_v30 }
  0x20   :  { %850 = vmatpush3.bf16.msra.mxu0 %v955_v31 }
  0x21   :  { %872 = vmatpush3.bf16.msra.mxu1 %v956_v32  ;;  %879 = vmatprep.subr.bf16.mxu0 %v958_v35 }
  0x22   :  { %901 = vmatprep.subr.bf16.mxu1 %v959_v38 }
  0x23   :  { %627 = vmatmul.mubr.bf16.vlgmr.msra.gmra.mrb[0].mxu0 %v176_v45 }
  0x24   :  { %880 = vmatpush3.bf16.msra.mxu0 %v960_v48  ;;  %667 = vmatmul.mubr.bf16.vlgmr.msra.gmra.mrb[0].mxu1 %v198_v50 }
  0x25   :  { %881 = vmatprep.subr.bf16.mxu0 %v962_v51  ;;  %902 = vmatpush3.bf16.msra.mxu1 %v961_v53 }
  0x26   :  { %706 = vmatprep.mubr.bf16.mxu0 %v197_v49  ;;  %903 = vmatprep.subr.bf16.mxu1 %v963_v54 }
  0x27   :  { %746 = vmatprep.mubr.bf16.mxu1 %v201_v55 }
  0x28   :  { %882 = vmatpush3.bf16.msra.mxu0 %v964_v56 }
  0x29   :  { %883 = vmatprep.subr.bf16.mxu0 %v966_v57  ;;  %904 = vmatpush3.bf16.msra.mxu1 %v965_v58 }
  0x2a   :  { %905 = vmatprep.subr.bf16.mxu1 %v967_v59 }
  0x2c   :  { %884 = vmatpush3.bf16.msra.mxu0 %v968_v60 }
  0x2d   :  { %885 = vmatprep.subr.bf16.mxu0 %v970_v61  ;;  %906 = vmatpush3.bf16.msra.mxu1 %v969_v62 }
  0x2e   :  { %907 = vmatprep.subr.bf16.mxu1 %v971_v63 }
  0x30   :  { %886 = vmatpush3.bf16.msra.mxu0 %v972_v0 }
  0x31   :  { %887 = vmatprep.subr.bf16.mxu0 %v974_v1  ;;  %908 = vmatpush3.bf16.msra.mxu1 %v973_v2 }
  0x32   :  { %909 = vmatprep.subr.bf16.mxu1 %v975_v3 }
  0x34   :  { %888 = vmatpush3.bf16.msra.mxu0 %v976_v4 }
  0x35   :  { %889 = vmatprep.subr.bf16.mxu0 %v978_v5 }
  0x36   :  { %8 = vsyncpa [#allocation3], 0  ;;  %910 = vmatpush3.bf16.msra.mxu1 %v977_v6  ;;  %v981_v10 = vld [vmem:[%s1260_s1 + $0x1a8] sm:$0xff]   ;;  %v983_v11 = vld [vmem:[%s1260_s1 + $0x1f0] sm:$0xff]   ;;  %v183_v17 = vrot.slane %v1145_v43, %v1141_v41  ;;  %vm754_vm0 = vcmask 254976  }
  0x37   :  { %911 = vmatprep.subr.bf16.mxu1 %v979_v7  ;;  %v984_v12 = vld [vmem:[%s1260_s1 + $0x130] sm:$0xff]   ;;  %v986_v13 = vld [vmem:[%s1260_s1 + $0x178] sm:$0xff]   ;;  %v770_v21 = vld [vmem:[%s1261_s2] ss:$0 sm:$0xff] }
  0x38   :  { %890 = vmatpush3.bf16.msra.mxu0 %v980_v8  ;;  %v985_v14 = vld [vmem:[%s1260_s1 + $0x1b0] sm:$0xff]   ;;  %v987_v15 = vld [vmem:[%s1260_s1 + $0x1f8] sm:$0xff]   ;;  %v199_v19 = vcombine.high %v183_v17, %v183_v17 }
  0x39   :  { %891 = vmatprep.subr.bf16.mxu0 %v982_v9  ;;  %v988_v16 = vld [vmem:[%s1260_s1 + $0x138] sm:$0xff]  }
  0x3a   :  { %912 = vmatpush3.bf16.msra.mxu1 %v981_v10  ;;  %v989_v18 = vld [vmem:[%s1260_s1 + $0x1b8] sm:$0xff]   ;;  %s1015_s1 = smov [#allocation2]  }
  0x3b   :  { %913 = vmatprep.subr.bf16.mxu1 %v983_v11  ;;  %s762_s2 = sshll.u32 %s1015_s1, 4  ;;  %s763_s2 = int_to_ptr.vmem [resolvable:$true] %s762_s2 }
  0x3c   :  { %892 = vmatpush3.bf16.msra.mxu0 %v984_v12  ;;  %s990_s6 = scalar_lea.vmem %s763_s2, 32  ;;  %p995_p1 = scmp.lt.s32.totalorder %s763_s2, %s763_s2 }
  0x3d   :  { %893 = vmatprep.subr.bf16.mxu0 %v986_v13  ;;  %p991_p0 = scmp.ne.s32.totalorder %s763_s2, %s990_s6  ;;  %p996_p2 = scmp.lt.s32.totalorder %s990_s6, %s990_s6 }
  0x3e   :  { %914 = vmatpush3.bf16.msra.mxu1 %v985_v14 }
  0x3f   :  { %915 = vmatprep.subr.bf16.mxu1 %v987_v15  ;;  %p997_p3 = por %p996_p2, %p995_p1 }
  0x40   :  { %894 = vmatpush3.bf16.msra.mxu0 %v988_v16 }
  0x41   :  { %p998_p4 = pnand %p997_p3, %p991_p0 }
  0x42   :  { %916 = vmatpush3.bf16.msra.mxu1 %v989_v18 }
  0x43   :  { %707 = vmatmul.mubr.bf16.vlgmr.msra.gmra.mrb[4].mxu0 %v183_v17 }
  0x45   :  { %747 = vmatmul.mubr.bf16.vlgmr.msra.gmra.mrb[4].mxu1 %v199_v19 }
  0xf6   :  { %v851_v20 = vpop.f32.mrb[0].mxu0 }
  0xf7   :  { %v852_v22 = vpop.f32.mrb[1].mxu0  ;;  %v873_v23 = vpop.f32.mrb[0].mxu1 }
  0xf8   :  { %v853_v24 = vadd.f32 %v852_v22, %v851_v20  ;;  %v854_v25 = vpop.f32.mrb[2].mxu0  ;;  %v874_v26 = vpop.f32.mrb[1].mxu1 }
  0xf9   :  { %v855_v27 = vpop.f32.mrb[3].mxu0  ;;  %v875_v29 = vadd.f32 %v874_v26, %v873_v23  ;;  %v876_v30 = vpop.f32.mrb[2].mxu1 }
  0xfa   :  { %v629_v28 = vadd.f32 %v853_v24, %v770_v21  ;;  %v877_v31 = vpop.f32.mrb[3].mxu1 }
  0xfc   :  { %v669_v32 = vadd.f32 %v875_v29, %v629_v28 }
 0x116   :  { %v895_v33 = vpop.f32.mrb[4].mxu0 }
 0x117   :  { %v896_v34 = vpop.f32.mrb[5].mxu0 }
 0x118   :  { %v917_v35 = vpop.f32.mrb[4].mxu1  ;;  %v897_v36 = vadd.f32 %v896_v34, %v895_v33  ;;  %v898_v37 = vpop.f32.mrb[6].mxu0 }
 0x119   :  { %v918_v38 = vpop.f32.mrb[5].mxu1  ;;  %v899_v39 = vpop.f32.mrb[7].mxu0 }
 0x11a   :  { %v709_v40 = vadd.f32 %v897_v36, %v669_v32  ;;  %v919_v41 = vadd.f32 %v918_v38, %v917_v35  ;;  %v920_v42 = vpop.f32.mrb[6].mxu1 }
 0x11b   :  { %v921_v43 = vpop.f32.mrb[7].mxu1 }
 0x11c   :  { %v749_v44 = vadd.f32 %v919_v41, %v709_v40 }
 0x11e   :  { %755 = vst.msk [vmem:[#allocation2] sm:$0x3] %vm754_vm0, %v749_v44 }
 0x11f   :  { %1001 = shalt.err (!%p998_p4)
}
 0x120   :  { %s1002_s9 = scalar_lea.hbm %s1262_s3, 32 }
 0x121   :  { %p1003_p5 = scmp.ne.s32.totalorder %s1262_s3, %s1002_s9  ;;  %p1006_p6 = scmp.lt.u32.totalorder %s1002_s9, %s1262_s3 }
 0x123   :  { %p1008_p7 = pnand %p1006_p6, %p1003_p5 }
 0x125   :  { %1011 = shalt.err (!%p1008_p7)
}
 0x126   :  { %765 = dma.vmem_to_hbm [thread:$0]  %s763_s2, 32, %s1262_s3, [#allocation3]  }
 0x127   :  { %1012 = dma.done.wait [#allocation3], 32  }
 0x128   :  { %1013 = vsyncadd [#allocation3], 4294967264 }
 0x129   :  { %769 = vsyncpa [#allocation3], 1 }

</bundles_post_ra>
